<compile_context>
chip_gen: v7x
topology: tpu7x:2x2x1
jax: 0.10.0
libtpu: 0.0.40
codegen_flags: <defaults>
</compile_context>

<pallas_src>
import functools

import jax
import jax.numpy as jnp
from jax.experimental import pallas as pl
from jax.experimental.pallas import tpu as pltpu

_LANE = 128


def _round_up(x: int, m: int) -> int:
    return ((x + m - 1) // m) * m


def _vmem_capacity_bytes() -> int:
    try:
        return int(pltpu.get_tpu_info().vmem_capacity_bytes)
    except Exception:
        return 64 * 1024 * 1024  # conservative fallback (v7x per-TC VMEM)


def _choose_tiling(N: int, C: int, HW: int, itemsize: int, budget_bytes: int):
    """Pick (nb, t_hw): images per block and spatial lanes per block."""
    lanes_budget = max(_LANE, budget_bytes // max(itemsize * C, 1))
    t_hw = max(_LANE, (lanes_budget // _LANE) * _LANE)
    if t_hw >= HW:
        # Whole spatial extent fits in one block.  block dim == full array dim
        # is always layout-legal (even when HW % 128 != 0); spend the leftover
        # budget batching several images per block.
        t_hw = HW
        per_image = itemsize * C * _round_up(HW, _LANE)
        nb = max(1, min(N, budget_bytes // max(per_image, 1)))
        # keep enough grid steps for double-buffering / both TensorCores
        if N >= 8:
            nb = min(nb, max(1, N // 8))
        elif N >= 2:
            nb = min(nb, max(1, N // 2))
    else:
        nb = 1  # t_hw is a multiple of 128; edge spatial block is masked
    return nb, t_hw


def _l2norm_kernel(x_ref, w_ref, o_ref, *, eps: float):
    # x_ref / o_ref: (nb, C, t_hw); w_ref: (1, C, t_hw).
    x = x_ref[...]
    xf = x.astype(jnp.float32)
    # Channel (sublane) reduction -> one squared norm per spatial column.
    sumsq = jnp.sum(xf * xf, axis=1, keepdims=True)        # (nb, 1, t_hw) fp32
    # eps is added to the norm (not the squared sum) to match the PyTorch module.
    inv = pl.reciprocal(jnp.sqrt(sumsq) + eps)              # fp32, one per column
    w = w_ref[...]
    if w.dtype == jnp.float32:
        # fp32 path (also used on v5e, which has no bf16 VALU).
        o_ref[...] = (w * (xf * inv)).astype(o_ref.dtype)
    else:
        # Low-precision path: keep the big broadcast multiplies in the native
        # dtype (bf16 VALU on v6e/v7x); only the reduction ran in fp32.
        o_ref[...] = (w * (x * inv.astype(x.dtype))).astype(o_ref.dtype)


def l2_norm(x: jax.Array, weight: jax.Array, eps: float = 1e-10) -> jax.Array:
    """x: (N, C, H, W); weight: scalar, (C,), or anything reshaping to (C,)."""
    N, C, H, W = x.shape
    HW = H * W
    itemsize = jnp.dtype(x.dtype).itemsize

    cap = _vmem_capacity_bytes()
    vmem_limit = min(int(0.75 * cap), 64 << 20)        # ~48 MiB v7x, 64 MiB v5e/v6e
    budget = max(1 << 20, vmem_limit // 12)            # per-block bytes (native dtype)
    nb, t_hw = _choose_tiling(N, C, HW, itemsize, budget)

    # Sub-32-bit inputs keep the broadcast multiplies in their own dtype.
    mul_dtype = jnp.float32 if itemsize >= 4 else x.dtype
    mul_itemsize = jnp.dtype(mul_dtype).itemsize

    w = jnp.asarray(weight, dtype=jnp.float32).reshape(-1)
    if w.size == 1:
        w = jnp.broadcast_to(w, (C,))
    elif w.size != C:
        raise ValueError(f"weight has {w.size} elements, expected {C} (or 1)")
    w3 = jnp.broadcast_to(w.reshape(1, C, 1), (1, C, t_hw)).astype(mul_dtype)

    x3 = x.reshape(N, C, HW)
    grid = (pl.cdiv(N, nb), pl.cdiv(HW, t_hw))

    # If even the minimum block cannot fit under the default limit (very large
    # C), raise the limit toward physical VMEM instead of failing.
    est = (4 * nb * C * t_hw * itemsize        # double-buffered in + out blocks
           + 3 * nb * C * t_hw * 4             # fp32 body temporaries
           + 2 * C * t_hw * mul_itemsize       # weight block
           + (1 << 20))
    vmem_limit = max(vmem_limit, min(int(0.92 * cap), int(est)))

    cost = pl.CostEstimate(
        flops=4 * N * C * HW,
        transcendentals=2 * N * HW,
        bytes_accessed=2 * N * C * HW * itemsize + C * t_hw * mul_itemsize,
    )

    block = (nb, C, t_hw)
    out3 = pl.pallas_call(
        functools.partial(_l2norm_kernel, eps=float(eps)),
        out_shape=jax.ShapeDtypeStruct((N, C, HW), x.dtype),
        grid_spec=pltpu.PrefetchScalarGridSpec(
            num_scalar_prefetch=0,
            grid=grid,
            in_specs=[
                pl.BlockSpec(block, lambda n, t: (n, 0, t)),
                pl.BlockSpec((1, C, t_hw), lambda n, t: (0, 0, 0)),
            ],
            out_specs=pl.BlockSpec(block, lambda n, t: (n, 0, t)),
        ),
        compiler_params=pltpu.CompilerParams(
            # TODO(synk): on v7x, verify both TensorCores pick up grid work;
            # if not, switch the leading axis to pltpu.CORE_PARALLEL.
            dimension_semantics=("parallel", "parallel"),
            vmem_limit_bytes=int(vmem_limit),
        ),
        cost_estimate=cost,
    )(x3, w3)

    return out3.reshape(N, C, H, W)


class L2Norm:
    """JAX/Pallas equivalent of the torchlake L2Norm module (forward only)."""

    def __init__(self, input_channel: int, scale: float = 1.0):
        self.input_channel = input_channel
        self.gamma = scale
        self.eps = 1e-10
        # torch.full((1, C, 1, 1), scale).float()
        self.weight = jnp.full((1, input_channel, 1, 1), scale, dtype=jnp.float32)

    def __call__(self, x: jax.Array) -> jax.Array:
        return l2_norm(x, self.weight, self.eps)


def _reference(x, weight, eps):
    xf = x.astype(jnp.float32)
    norm = jnp.sqrt(jnp.sum(xf * xf, axis=1, keepdims=True))
    w = jnp.asarray(weight, jnp.float32).reshape(1, -1, 1, 1)
    return (w * (xf / (norm + eps))).astype(x.dtype)


if __name__ == "__main__":
    # Case 1: small shape, HW a multiple of 128.
    key = jax.random.PRNGKey(0)
    N, C, H, W = 2, 4, 16, 16
    x = jax.random.normal(key, (N, C, H, W), dtype=jnp.float32)
    module = L2Norm(input_channel=C, scale=2.0)
    out = jax.block_until_ready(module(x))
    ref = _reference(x, module.weight, module.eps)
    assert out.shape == (N, C, H, W)
    assert jnp.allclose(out, ref, atol=1e-5, rtol=1e-5), "case 1 mismatch vs reference"

    # Case 2: ragged spatial size (HW = 36), exercises the unpadded edge path.
    key2 = jax.random.PRNGKey(1)
    N2, C2, H2, W2 = 2, 8, 6, 6
    x2 = jax.random.normal(key2, (N2, C2, H2, W2), dtype=jnp.float32)
    module2 = L2Norm(input_channel=C2, scale=0.5)
    out2 = jax.block_until_ready(module2(x2))
    ref2 = _reference(x2, module2.weight, module2.eps)
    assert out2.shape == (N2, C2, H2, W2)
    assert jnp.allclose(out2, ref2, atol=1e-5, rtol=1e-5), "case 2 mismatch vs reference"

    # Case 3: bf16 input, exercises the native-dtype multiply path.
    key3 = jax.random.PRNGKey(2)
    x3 = jax.random.normal(key3, (2, 4, 16, 16), dtype=jnp.bfloat16)
    module3 = L2Norm(input_channel=4, scale=1.5)
    out3 = jax.block_until_ready(module3(x3))
    ref3 = _reference(x3, module3.weight, module3.eps)
    assert out3.shape == (2, 4, 16, 16)
    assert jnp.allclose(out3.astype(jnp.float32), ref3.astype(jnp.float32),
                        atol=3e-2, rtol=3e-2), "case 3 mismatch vs reference"

    print("KERNEL_OK")
</pallas_src>

<mosaic_0001>
module attributes {stable_mosaic.version = 11 : i64} {
  func.func @_l2norm_kernel(%arg0: i32, %arg1: i32, %arg2: memref<1x4x256xf32, #tpu.memory_space<vmem>>, %arg3: memref<1x4x256xf32, #tpu.memory_space<vmem>>, %arg4: memref<1x4x256xf32, #tpu.memory_space<vmem>>) attributes {dimension_semantics = [#tpu.dimension_semantics<parallel>, #tpu.dimension_semantics<parallel>], iteration_bounds = array<i64: 2, 1>, scalar_prefetch = 0 : i64, scratch_operands = 0 : i64, tpu.core_type = #tpu.core_type<tc>, window_params = [{transform_indices = @transform_0, window_bounds = array<i64: 1, 4, 256>}, {pipeline_mode = #tpu.pipeline_mode<synchronous>, transform_indices = @transform_1, window_bounds = array<i64: 1, 4, 256>}, {transform_indices = @transform_2, window_bounds = array<i64: 1, 4, 256>}]} {
    %c0 = arith.constant 0 : index
    %c0_0 = arith.constant 0 : index
    %c0_1 = arith.constant 0 : index
    %0 = vector.load %arg2[%c0, %c0_0, %c0_1] : memref<1x4x256xf32, #tpu.memory_space<vmem>>, vector<1x4x256xf32>
    %1 = arith.mulf %0, %0 : vector<1x4x256xf32>
    %cst = arith.constant dense<0.000000e+00> : vector<1x256xf32>
    %2 = vector.multi_reduction <add>, %1, %cst [1] : vector<1x4x256xf32> to vector<1x256xf32>
    %3 = vector.shape_cast %2 : vector<1x256xf32> to vector<1x1x256xf32>
    %4 = math.sqrt %3 : vector<1x1x256xf32>
    %cst_2 = arith.constant 1.000000e-10 : f32
    %5 = vector.broadcast %cst_2 : f32 to vector<1x1x256xf32>
    %6 = arith.addf %4, %5 : vector<1x1x256xf32>
    %7 = tpu.reciprocal %6 : vector<1x1x256xf32> -> vector<1x1x256xf32>
    %c0_3 = arith.constant 0 : index
    %c0_4 = arith.constant 0 : index
    %c0_5 = arith.constant 0 : index
    %8 = vector.load %arg3[%c0_3, %c0_4, %c0_5] : memref<1x4x256xf32, #tpu.memory_space<vmem>>, vector<1x4x256xf32>
    %9 = vector.broadcast %7 : vector<1x1x256xf32> to vector<1x4x256xf32>
    %10 = arith.mulf %0, %9 : vector<1x4x256xf32>
    %11 = arith.mulf %8, %10 : vector<1x4x256xf32>
    %c0_6 = arith.constant 0 : index
    %c0_7 = arith.constant 0 : index
    %c0_8 = arith.constant 0 : index
    %12 = vector.load %arg4[%c0_6, %c0_7, %c0_8] : memref<1x4x256xf32, #tpu.memory_space<vmem>>, vector<1x4x256xf32>
    tpu.vector_store %arg4[%c0_6, %c0_7, %c0_8], %11 {strides = array<i32>} : memref<1x4x256xf32, #tpu.memory_space<vmem>>, vector<1x4x256xf32>,
    return
  }
  func.func @transform_0(%arg0: i32, %arg1: i32) -> (i32, i32, i32) {
    %c0_i32 = arith.constant 0 : i32
    %c0_i32_0 = arith.constant 0 : i32
    return %arg0, %c0_i32, %arg1 : i32, i32, i32
  }
  func.func @transform_1(%arg0: i32, %arg1: i32) -> (i32, i32, i32) {
    %c0_i32 = arith.constant 0 : i32
    %c0_i32_0 = arith.constant 0 : i32
    %c0_i32_1 = arith.constant 0 : i32
    %c0_i32_2 = arith.constant 0 : i32
    return %c0_i32, %c0_i32_0, %c0_i32_1 : i32, i32, i32
  }
  func.func @transform_2(%arg0: i32, %arg1: i32) -> (i32, i32, i32) {
    %c0_i32 = arith.constant 0 : i32
    %c0_i32_0 = arith.constant 0 : i32
    return %arg0, %c0_i32, %arg1 : i32, i32, i32
  }
}

</mosaic_0001>

<bundles_post_ra>
// kernel: tpu_custom_call.1
= control target key start
LH: loop header
LB: loop body
LE: loop exit
PB: predicated region body
PF: predicated region fallthrough
CT: control target
= control target key end

     0   :  { %7 = vsyncpa [#allocation3], 0  ;;  %s834_s0 = inlined_call_operand.hbm [shape: f32[2,4,256], index: 0, kind: input, shape index: {}]   ;;  %s835_s1 = inlined_call_operand.hbm [shape: f32[1,4,256], index: 1, kind: input, shape index: {}]   ;;  %s836_s2 = inlined_call_operand.hbm [shape: f32[2,4,256], index: 2, kind: output, shape index: {}]  }
   0x1   :  { %9 = vsyncpa [#allocation3 + $0x1], 0 }
   0x2   :  { %10 = vsyncpa [#allocation6], 0 }
   0x3   :  { %11 = vsyncpa [#allocation4], 0 }
   0x4   :  { %13 = vsyncpa [#allocation4 + $0x1], 0  ;;  %s614_s9 = smov 0   ;;  %s616_s10 = smov 0  }
   0x5   :  { %s618_s11 = smov 0   ;;  %s620_s12 = smov 0  }
   0x6   :  { %s622_s13 = smov 0   ;;  %s624_s14 = smov 0  }
   0x7 LB: > { %s350_s15 = sadd.s32 4294967295, %s594_s14   ;;  %s351_s16 = sadd.s32 4294967294, %s594_s14   ;;  %s594_s14 = sphi %s624_s14, %s19_s14   ;;  %s590_s13 = sphi %s622_s13, %s861_s13   ;;  %s586_s12 = sphi %s620_s12, %s860_s12   ;;  %s582_s11 = sphi %s618_s11, %s859_s11   ;;  %s578_s10 = sphi %s616_s10, %s858_s10   ;;  %s574_s9 = sphi %s614_s9, %s857_s9  }
   0x8   : > { %p53_p0 = scmp.ne.s32.totalorder %s578_s10, %s574_s9  ;;  %p648_p1 = scmp.eq.s32.totalorder %s350_s15, 0 }
   0x9   : > { %p652_p2 = scmp.eq.s32.totalorder %s350_s15, 1  ;;  %p106_p3 = scmp.eq.s32.totalorder %s351_s16, 1 }
   0xa   : > { %s841_s17 = scalar_select %p648_p1, 1, 0 }
   0xb   : > { %s842_s18 = scalar_select %p652_p2, 1, 0 }
   0xc   : > { %p658_p4 = por %p648_p1, %p53_p0  ;;  %p352_p5 = scmp.ge.s32.totalorder %s594_s14, 1 }
   0xd   : > { %p663_p6 = por %p106_p3, %p53_p0  ;;  %p113_p7 = scmp.lt.s32.totalorder %s594_s14, 3 }
   0xe   : > { %s843_s19 = scalar_select %p658_p4, 1, 0 }
   0xf   : > { %s844_s20 = scalar_select %p663_p6, 1, 0 }
  0x10   : > { %p668_p8 = pnand %p352_p5, %p113_p7  ;;  %s596_s22 = smov [#allocation5]  }
  0x11   : > { %s126_s23 = sshll.u32 %s596_s22, 4  ;;  %s31_s25 = sadd.s32 1, %s590_s13  ;;  %s127_s23 = int_to_ptr.vmem [resolvable:$true] %s126_s23 }
  0x12   : > { %s845_s21 = scalar_select %p668_p8, 1, 0 }
  0x13   : > { %p377_p10 = pneg %p668_p8  ;;  %s40_s26 = sadd.s32 1, %s582_s11 }
  0x14   : > { %p683_p12 = scmp.ge.s32.totalorder %s31_s25, 2  ;;  %s450_s30 = scalar_lea.hbm %s835_s1, 128 }
  0x15   : > { %p677_p11 = pnand %p377_p10, %p648_p1  ;;  %p451_p13 = scmp.ne.s32.totalorder %s835_s1, %s450_s30 }
  0x16   : > { %s847_s27 = scalar_select %p683_p12, 1, 0 }
  0x17   : > { %p452_p0 = pneg %p677_p11  ;;  %p457_p7 = scmp.lt.u32.totalorder %s450_s30, %s835_s1 }
  0x19   : > { %p453_p3 = pnand %p452_p0, %p451_p13 }
  0x1b   : > { %p454_p5 = pneg %p453_p3 }
  0x1d   : > { %p459_p10 = pnand %p457_p7, %p454_p5 }
  0x1f   : > { %462 = shalt.err (!%p459_p10)
}
  0x20   : > { %s463_s7 = scalar_lea.vmem %s127_s23, 128  ;;  %p471_p4 = scmp.lt.s32.totalorder %s127_s23, %s127_s23 }
  0x21   : > { %p464_p9 = scmp.ne.s32.totalorder %s127_s23, %s463_s7  ;;  %p472_p8 = scmp.lt.s32.totalorder %s463_s7, %s463_s7 }
  0x23   : > { %p466_p6 = pnand %p464_p9, %p452_p0  ;;  %p473_p2 = por %p472_p8, %p471_p4 }
  0x25   : > { %p467_p1 = pneg %p466_p6 }
  0x27   : > { %p474_p12 = pnand %p473_p2, %p467_p1 }
  0x29   : > { %477 = shalt.err (!%p474_p12)
}
  0x2a   : > { %380 = dma.hbm_to_vmem [thread:$0]  (!%p677_p11), %s835_s1, 128, %s127_s23, [#allocation6]  }
  0x2b   : > { %p848_p4 = scmp.ne.s32.totalorder %s847_s27, 0  ;;  %p47_p1 = scmp.ne.s32.totalorder %s582_s11, %s578_s10 }
  0x2c   : > { %p48_p2 = scmp.eq.s32.totalorder %s594_s14, 0  ;;  %p390_p6 = scmp.lt.s32.totalorder %s594_s14, 2 }
  0x2d   : > { %s863_s25 = smov (%p848_p4, %s31_s25), 0  ;;  %p849_p12 = scmp.ne.s32.totalorder %s842_s18, 0 }
  0x2e   : > { %s35_s16 = ssub.s32 %s590_s13, %s863_s25  ;;  %p49_p9 = por %p48_p2, %p47_p1 }
  0x2f   : > { %p38_p8 = scmp.eq.s32.totalorder %s35_s16, 0  ;;  %p715_p13 = por %p849_p12, %p47_p1 }
  0x30   : > { %s137_s24 = sand.u32 1, %s582_s11   ;;  %s367_s27 = sshll.u32 %s590_s13, 7 }
  0x31   : > { %s723_s28 = scalar_select %p38_p8, %s582_s11, %s40_s26  }
  0x32   : > { %s355_s23 = sshll.u32 %s137_s24, 3  ;;  %s729_s3 = scalar_lea.hbm %s834_s0, %s367_s27 }
  0x33   : > { %s141_s18 = scalar_lea.vmem [#allocation2], %s355_s23  ;;  %p733_p11 = pnand %p390_p6, %p49_p9 }
  0x34   : > { %s151_s4 = sshll.u32 %s141_s18, 4  ;;  %s138_s26 = scalar_lea.sflag [#allocation3], %s137_s24  ;;  %s731_s4 = int_to_ptr.vmem [resolvable:$true] %s151_s4 }
  0x35   : > { %s478_s6 = scalar_lea.hbm %s729_s3, 128  ;;  %p480_p3 = pneg %p733_p11 }
  0x36   : > { %p479_p0 = scmp.ne.s32.totalorder %s729_s3, %s478_s6  ;;  %s483_s15 = scalar_lea.hbm %s834_s0, 256 }
  0x37   : > { %p484_p10 = scmp.lt.u32.totalorder %s729_s3, %s834_s0  ;;  %p485_p4 = scmp.lt.u32.totalorder %s483_s15, %s478_s6 }
  0x38   : > { %p481_p5 = pnand %p480_p3, %p479_p0  ;;  %p487_p2 = scmp.lt.u32.totalorder %s478_s6, %s729_s3 }
  0x39   : > { %p486_p1 = por %p485_p4, %p484_p10 }
  0x3a   : > { %p482_p7 = pneg %p481_p5 }
  0x3b   : > { %p488_p6 = por %p487_p2, %p486_p1 }
  0x3d   : > { %p489_p8 = pnand %p488_p6, %p482_p7 }
  0x3f   : > { %492 = shalt.err (!%p489_p8)
}
  0x40   : > { %s493_s24 = scalar_lea.vmem %s731_s4, 128  ;;  %s597_s27 = smov [#allocation2]  }
  0x41   : > { %p494_p9 = scmp.ne.s32.totalorder %s731_s4, %s493_s24  ;;  %s498_s29 = sshll.u32 %s597_s27, 4  ;;  %s499_s29 = int_to_ptr.vmem [resolvable:$false] %s498_s29 }
  0x42   : > { %s500_s30 = scalar_lea.vmem %s499_s29, 256  ;;  %p501_p5 = scmp.lt.s32.totalorder %s731_s4, %s499_s29 }
  0x43   : > { %p496_p12 = pnand %p494_p9, %p480_p3  ;;  %p502_p10 = scmp.lt.s32.totalorder %s500_s30, %s493_s24 }
  0x45   : > { %p497_p0 = pneg %p496_p12  ;;  %p503_p4 = por %p502_p10, %p501_p5 }
  0x47   : > { %p504_p1 = pnand %p503_p4, %p497_p0 }
  0x49   : > { %507 = shalt.err (!%p504_p1)
}
  0x4a   : > { %384 = dma.hbm_to_vmem [thread:$0]  (!%p733_p11), %s729_s3, 128, %s731_s4, %s138_s26  }
  0x4b   : > { %p852_p7 = scmp.ne.s32.totalorder %s845_s21, 0 }
  0x4c   : > { %s765_s18 = sand.u32 (!%p852_p7), 1, %s578_s10   ;;  %p853_p3 = scmp.ne.s32.totalorder (!%p852_p7), %s843_s19, 0 }
  0x4d   : > { %160 = sbr.rel (%p852_p7) target bundleno = 154 (0x9a), region = 28  ;;  %s359_s6 = sshll.u32 (!%p852_p7), %s765_s18, 3 }
  0x4e   : > { %s163_s7 = scalar_lea.sflag (!%p852_p7), [#allocation3], %s765_s18  ;;  %s166_s8 = scalar_lea.vmem (!%p852_p7), [#allocation2], %s359_s6 }
  0x54   : > { %561 = dma.done.wait (%p853_p3), %s163_s7, 128  }
  0x55   : > { %563 = vsyncadd (%p853_p3), %s163_s7, 4294967168  ;;  %p854_p11 = scmp.ne.s32.totalorder %s841_s17, 0 }
  0x57   : > { %565 = dma.done.wait (%p854_p11), [#allocation6], 128  }
  0x58   : > { %567 = vsyncadd (%p854_p11), [#allocation6], 4294967168  ;;  %v193_v0 = vld [vmem:[%s166_s8] sm:$0xff]  ;;  %vm198_vm0 = vcmask 1043456   ;;  %v231_v32 = vld [vmem:[#allocation5] sm:$0xff]  ;;  %s190_s17 = scalar_lea.vmem [#allocation7], %s359_s6 }
  0x59   : > { %v194_v1 = vmul.f32 %v193_v0, %v193_v0  ;;  %s256_s19 = sshll.u32 %s190_s17, 4  ;;  %s368_s21 = sshll.u32 %s586_s12, 7  ;;  %s782_s19 = int_to_ptr.vmem [resolvable:$true] %s256_s19 }
  0x5a   : > { %s787_s5 = scalar_lea.hbm %s836_s2, %s368_s21  ;;  %s240_s26 = scalar_lea.sflag [#allocation4], %s765_s18 }
  0x5b   : > { %v196_v2 = vcombine.high %v194_v1, %v194_v1  ;;  %v199_v3 = vsel %vm198_vm0, %v194_v1, 0.0  ;;  %s508_s15 = scalar_lea.vmem %s782_s19, 128  ;;  %s598_s12 = smov [#allocation7]  }
  0x5c   : > { %v200_v4 = vrot.slane %v199_v3, 4  ;;  %p509_p2 = scmp.ne.s32.totalorder %s782_s19, %s508_s15  ;;  %s512_s16 = sshll.u32 %s598_s12, 4  ;;  %s513_s16 = int_to_ptr.vmem [resolvable:$false] %s512_s16 }
  0x5d   : > { %v206_v5 = vsel %vm198_vm0, %v196_v2, 0.0  ;;  %s514_s23 = scalar_lea.vmem %s513_s16, 256  ;;  %p515_p9 = scmp.lt.s32.totalorder %s782_s19, %s513_s16 }
  0x5e   : > { %v201_v6 = vadd.f32 %v200_v4, %v199_v3  ;;  %v207_v7 = vrot.slane %v206_v5, 4  ;;  %p510_p6 = pnand %p509_p2, %p715_p13  ;;  %p516_p12 = scmp.lt.s32.totalorder %s514_s23, %s508_s15 }
  0x60   : > { %v202_v8 = vrot.slane %v201_v6, 2  ;;  %v208_v9 = vadd.f32 %v207_v7, %v206_v5  ;;  %p511_p8 = pneg %p510_p6  ;;  %p517_p0 = por %p516_p12, %p515_p9 }
  0x62   : > { %v203_v10 = vadd.f32 %v202_v8, %v201_v6  ;;  %v209_v11 = vrot.slane %v208_v9, 2  ;;  %p518_p5 = pnand %p517_p0, %p511_p8 }
  0x64   : > { %v204_v12 = vrot.slane %v203_v10, 1  ;;  %v210_v13 = vadd.f32 %v209_v11, %v208_v9 }
  0x66   : > { %v205_v14 = vadd.f32 %v204_v12, %v203_v10  ;;  %v211_v15 = vrot.slane %v210_v13, 1 }
  0x68   : > { %v212_v16 = vadd.f32 %v211_v15, %v210_v13  ;;  %442 = vrsqrt.f32 %v205_v14  ;;  %vm215_vm1 = vcmp.eq.f32.partialorder %v205_v14, inf  ;;  %v218_v18 = vand.u32 2147483648, %v205_v14 }
  0x69   : > { %vm217_vm2 = vcmp.eq.f32.partialorder %v205_v14, 0.0 }
  0x6a   : > { %444 = vrsqrt.f32 %v212_v16  ;;  %vm222_vm3 = vcmp.eq.f32.partialorder %v212_v16, inf  ;;  %v225_v21 = vand.u32 2147483648, %v212_v16  ;;  %vm224_vm4 = vcmp.eq.f32.partialorder %v212_v16, 0.0 }
  0x72   : > { %v443_v17 = vpop.eup %442 }
  0x73   : > { %v214_v19 = vmul.f32 %v443_v17, %v205_v14 }
  0x74   : > { %v445_v20 = vpop.eup %444 }
  0x75   : > { %v216_v22 = vsel %vm215_vm1, %v205_v14, %v214_v19  ;;  %v221_v23 = vmul.f32 %v445_v20, %v212_v16 }
  0x76   : > { %v219_v24 = vsel %vm217_vm2, %v218_v18, %v216_v22 }
  0x77   : > { %v223_v25 = vsel %vm222_vm3, %v212_v16, %v221_v23  ;;  %v227_v26 = vadd.f32 1e-10, %v219_v24 }
  0x78   : > { %v226_v27 = vsel %vm224_vm4, %v225_v21, %v223_v25 }
  0x79   : > { %v228_v28 = vadd.f32 1e-10, %v226_v27  ;;  %446 = vrcp.f32 %v227_v26 }
  0x7b   : > { %448 = vrcp.f32 %v228_v28 }
  0x83   : > { %v447_v29 = vpop.eup %446 }
  0x85   : > { %v449_v30 = vpop.eup %448 }
  0x86   : > { %v234_v31 = vcombine.low %v447_v29, %v449_v30 }
  0x88   : > { %v236_v33 = vmul.f32 %v234_v31, %v193_v0 }
  0x8a   : > { %v237_v34 = vmul.f32 %v236_v33, %v231_v32 }
  0x8c   : > { %238 = vst [vmem:[%s190_s17] sm:$0xff] %v237_v34 }
  0x8d   : > { %521 = shalt.err (!%p518_p5)
}
  0x8e   : > { %s522_s24 = scalar_lea.hbm %s787_s5, 128  ;;  %s526_s30 = scalar_lea.hbm %s836_s2, 256 }
  0x8f   : > { %p523_p10 = scmp.ne.s32.totalorder %s787_s5, %s522_s24  ;;  %p527_p7 = scmp.lt.u32.totalorder %s787_s5, %s836_s2 }
  0x90   : > { %p528_p3 = scmp.lt.u32.totalorder %s526_s30, %s522_s24  ;;  %p530_p2 = scmp.lt.u32.totalorder %s522_s24, %s787_s5 }
  0x91   : > { %p524_p4 = pnand %p523_p10, %p715_p13 }
  0x92   : > { %p529_p11 = por %p528_p3, %p527_p7 }
  0x93   : > { %p525_p1 = pneg %p524_p4 }
  0x94   : > { %p531_p6 = por %p530_p2, %p529_p11 }
  0x96   : > { %p532_p8 = pnand %p531_p6, %p525_p1 }
  0x98   : > { %535 = shalt.err (!%p532_p8)
}
  0x99   : > { %375 = dma.vmem_to_hbm [thread:$0]  (%p715_p13), %s782_s19, 128, %s787_s5, %s240_s26  }
  0x9a PF: > { %s268_s7 = sand.u32 1, %s574_s9   ;;  %p855_p9 = scmp.ne.s32.totalorder %s844_s20, 0 }
  0x9b   : > { %p856_p12 = scmp.ge.s32.totalorder %s594_s14, 2  ;;  %s269_s8 = scalar_lea.sflag [#allocation4], %s268_s7 }
  0x9d   : > { %p386_p0 = pnand %p856_p12, %p855_p9 }
  0x9f   : > { %569 = dma.done.wait (!%p386_p0), %s269_s8, 128  }
  0xa0   : > { %571 = vsyncadd (!%p386_p0), %s269_s8, 4294967168  ;;  %s19_s14 = sadd.s32 1, %s594_s14   ;;  %s857_s9 = smov %s578_s10 }
  0xa1   : > { %p16_p5 = scmp.ge.s32.totalorder %s19_s14, 4   ;;  %s858_s10 = smov %s582_s11 }
  0xa2   : > { %s859_s11 = smov %s723_s28  ;;  %s860_s12 = smov %s590_s13 }
  0xa3   : > { %s861_s13 = smov %s863_s25  ;;  %18 = sbr.rel (!%p16_p5) target bundleno = 7 (0x7), region = 77 }
  0xaa   :  { %274 = vsyncpa [#allocation3], 1 }
  0xab   :  { %276 = vsyncpa [#allocation3 + $0x1], 1 }
  0xac   :  { %277 = vsyncpa [#allocation6], 1 }
  0xad   :  { %278 = vsyncpa [#allocation4], 1 }
  0xae   :  { %280 = vsyncpa [#allocation4 + $0x1], 1 }

</bundles_post_ra>
